<compile_context>
chip_gen: v6e
topology: v6e:2x2x1
jax: 0.10.0
libtpu: 0.0.40
codegen_flags: <defaults>
</compile_context>

<pallas_src>
import functools

import jax
import jax.numpy as jnp
from jax.experimental import pallas as pl
from jax.experimental.pallas import tpu as pltpu


def _default_num_cores():
    """2 on multi-TensorCore chips (v4 / v5p megacore, v7x), else 1."""
    try:
        kind = jax.devices()[0].device_kind.lower()
    except Exception:
        return 1
    if any(tag in kind for tag in ("v4", "v5p", "v7", "7x")):
        return 2
    return 1


def _composite_stats_kernel(pred_ref, tgt_ref, stats_ref, scal_ref,
                            inter_acc, psum_acc, tsum_acc, foc_acc, ce_acc,
                            *, gamma, hw, tile, hsc, needs_mask):
    """Accumulates reduction statistics over lane-dense pixel tiles.

    pred_ref : (C, T) f32/bf16 logits tile (class-major, pixels on lanes)
    tgt_ref  : (1, T) int8/int32 class-label tile
    stats_ref: (C, 3) f32 output  [:,0]=sum(p*onehot) [:,1]=sum(p) [:,2]=sum(onehot)
    scal_ref : (1, 2) f32 output  [0,0]=focal sum, [0,1]=ce sum
    *_acc    : VMEM scratch accumulators (written to the outputs once per core)
    """
    core = pl.program_id(0)
    bn = pl.program_id(1)
    j = pl.program_id(2)
    nb = pl.num_programs(1)

    @pl.when((bn == 0) & (j == 0))
    def _():
        inter_acc[...] = jnp.zeros_like(inter_acc)
        psum_acc[...] = jnp.zeros_like(psum_acc)
        tsum_acc[...] = jnp.zeros_like(tsum_acc)
        foc_acc[...] = jnp.zeros_like(foc_acc)
        ce_acc[...] = jnp.zeros_like(ce_acc)

    x = pred_ref[...].astype(jnp.float32)          # (C, T)
    tgt = tgt_ref[...].astype(jnp.int32)           # (1, T)
    c, t = x.shape

    if needs_mask:
        # Only emitted when the pixel axis is actually ragged/overshot.
        # hw index stays per-image, so int32 is safe for any realistic H*W.
        hw_off = (core * hsc + j) * tile
        lane = jax.lax.broadcasted_iota(jnp.int32, (1, t), 1)
        valid = (hw_off + lane) < hw               # (1, T) bool
        x = jnp.where(valid, x, 0.0)               # padded cols -> uniform softmax
        tgt = jnp.where(valid, tgt, c)             # sentinel class -> zero one-hot

    # softmax / log-denominator over the class (sublane) axis (C rows only).
    m = jnp.max(x, axis=0, keepdims=True)          # (1, T)
    z = x - m
    ez = jnp.exp(z)
    denom = jnp.sum(ez, axis=0, keepdims=True)     # (1, T), in [1, C]
    inv = pl.reciprocal(denom, approx=True)        # EUP slot
    inv = inv * (2.0 - denom * inv)                # one Newton step (cheap, (1,T))
    p = ez * inv                                   # (C, T) softmax probs
    logdenom = jnp.log(denom)                      # (1, T)

    # one-hot along the class (sublane) axis; sentinel targets stay all-zero.
    cls = jax.lax.broadcasted_iota(jnp.int32, (c, t), 0)
    onehot = (cls == tgt).astype(jnp.float32)      # (C, T)
    po = p * onehot

    # --- Dice statistics: per-class pixel sums ---
    inter_acc[...] += jnp.sum(po, axis=1, keepdims=True)      # (C, 1)
    psum_acc[...] += jnp.sum(p, axis=1, keepdims=True)        # (C, 1) (pad-corrected in JAX)
    tsum_acc[...] += jnp.sum(onehot, axis=1, keepdims=True)   # (C, 1)

    # --- Focal / CE statistics (gather via one-hot contraction) ---
    t_row = jnp.sum(onehot, axis=0, keepdims=True)            # (1, T): 1 valid / 0 pad
    logpt = jnp.sum(z * onehot, axis=0, keepdims=True) - t_row * logdenom
    pt = jnp.sum(po, axis=0, keepdims=True)                   # (1, T)

    gi = int(round(gamma))
    if abs(gamma - gi) < 1e-9 and 0 <= gi <= 8:
        # integer gamma (default 2.0): repeated multiply, no log/exp pair.
        q = 1.0 - pt
        wgt = jnp.ones_like(pt)
        for _ in range(gi):
            wgt = wgt * q
    else:
        wgt = jnp.power(jnp.maximum(1.0 - pt, 0.0), gamma)

    foc_acc[...] += jnp.sum(-wgt * logpt, axis=1, keepdims=True)   # (1, 1)
    ce_acc[...] += jnp.sum(-logpt, axis=1, keepdims=True)          # (1, 1)

    # Write the narrow outputs once per core (last batch element, last tile).
    @pl.when((bn == nb - 1) & (j == hsc - 1))
    def _():
        stats_ref[:, 0:1] = inter_acc[...]
        stats_ref[:, 1:2] = psum_acc[...]
        stats_ref[:, 2:3] = tsum_acc[...]
        scal_ref[:, 0:1] = foc_acc[...]
        scal_ref[:, 1:2] = ce_acc[...]


def composite_loss(prediction, truth, *, dice_weight=0.3, focal_weight=0.3,
                   ce_weight=1.0, dice_smoothing=1e-6, focal_gamma=2.0,
                   tile_hw=32768, num_cores=None, logits_in_bf16=False):
    """prediction: (N, C, H, W) logits; truth: (N, H, W) int labels.

    Matches CompositeLoss with class_weights=None / focal_alpha=None and
    dice_num_classes == C.
    TODO(synk): per-class alpha / class_weights paths are not implemented.
    """
    n, c, h, w = prediction.shape
    hw = h * w
    p_total = n * hw

    # Free reshapes of the contiguous NCHW / NHW inputs — no transpose, no pad.
    pred = prediction.reshape(n, c, hw)
    pred = pred.astype(jnp.bfloat16 if logits_in_bf16 else jnp.float32)
    tgt_dtype = jnp.int8 if c < 127 else jnp.int32
    tgt = truth.reshape(n, 1, hw).astype(tgt_dtype)

    if num_cores is None:
        num_cores = _default_num_cores()

    # Pixel tiling along the lane axis of each image.
    if hw <= tile_hw:
        tile = hw                                   # full extent (any size allowed)
    else:
        tile = max(128, (min(tile_hw, hw) // 128) * 128)
    hw_tiles = pl.cdiv(hw, tile)
    nc = max(1, min(num_cores, hw_tiles))           # don't split tiny inputs
    hsc = pl.cdiv(hw_tiles, nc)                     # hw tiles per core
    processed = n * nc * hsc * tile                 # pixels touched (incl. padding)
    pad_pixels = processed - p_total
    needs_mask = pad_pixels != 0

    kernel = functools.partial(
        _composite_stats_kernel,
        gamma=float(focal_gamma), hw=hw, tile=tile, hsc=hsc,
        needs_mask=needs_mask)

    last_blk = hw_tiles - 1

    def in_map(core, bn, j):
        # Clamp fully-out-of-range tiles onto the last real block; their
        # contribution is masked out in-kernel.
        return (bn, 0, jnp.minimum(core * hsc + j, last_blk))

    stats, scal = pl.pallas_call(
        kernel,
        out_shape=(
            jax.ShapeDtypeStruct((nc, c, 3), jnp.float32),
            jax.ShapeDtypeStruct((nc, 1, 2), jnp.float32),
        ),
        grid_spec=pltpu.PrefetchScalarGridSpec(
            num_scalar_prefetch=0,
            grid=(nc, n, hsc),
            in_specs=[
                pl.BlockSpec((None, c, tile), in_map),
                pl.BlockSpec((None, 1, tile), in_map),
            ],
            out_specs=[
                pl.BlockSpec((None, c, 3), lambda core, bn, j: (core, 0, 0)),
                pl.BlockSpec((None, 1, 2), lambda core, bn, j: (core, 0, 0)),
            ],
            scratch_shapes=[
                pltpu.VMEM((c, 1), jnp.float32),   # intersection
                pltpu.VMEM((c, 1), jnp.float32),   # prob sum
                pltpu.VMEM((c, 1), jnp.float32),   # truth sum
                pltpu.VMEM((1, 1), jnp.float32),   # focal sum
                pltpu.VMEM((1, 1), jnp.float32),   # ce sum
            ],
        ),
        # TODO(synk): on v7x, verify in a profile that the leading axis is
        # sharded across both TensorCores; switch to pltpu.CORE_PARALLEL if not.
        compiler_params=pltpu.CompilerParams(
            dimension_semantics=("parallel", "arbitrary", "arbitrary"),
            vmem_limit_bytes=32 * 1024 * 1024),
    )(pred, tgt)

    # Sum per-core partials, then finish the O(C) math in JAX.
    stats = jnp.sum(stats, axis=0)   # (C, 3)
    scal = jnp.sum(scal, axis=0)     # (1, 2)

    inter = stats[:, 0]
    # Padded columns had zeroed logits -> uniform softmax; subtract their
    # exact contribution (pad_pixels / C per class) analytically.
    prob_sum = stats[:, 1] - (pad_pixels / c)
    truth_sum = stats[:, 2]

    dice_coeff = (2.0 * inter + dice_smoothing) / (
        prob_sum + truth_sum + dice_smoothing)
    dice_loss = jnp.mean(1.0 - dice_coeff)

    focal_loss = scal[0, 0] / p_total
    ce_loss = scal[0, 1] / p_total

    return dice_weight * dice_loss + focal_weight * focal_loss + ce_weight * ce_loss


def composite_loss_ref(prediction, truth, *, dice_weight=0.3, focal_weight=0.3,
                       ce_weight=1.0, dice_smoothing=1e-6, focal_gamma=2.0):
    """Pure-JAX reference mirroring the PyTorch semantics."""
    n, c, h, w = prediction.shape
    logits = jnp.transpose(prediction, (0, 2, 3, 1)).reshape(-1, c).astype(jnp.float32)
    tgt = truth.reshape(-1)
    logp = jax.nn.log_softmax(logits, axis=-1)
    p = jnp.exp(logp)
    onehot = jax.nn.one_hot(tgt, c, dtype=jnp.float32)

    inter = jnp.sum(p * onehot, axis=0)
    dice_coeff = (2.0 * inter + dice_smoothing) / (
        jnp.sum(p, axis=0) + jnp.sum(onehot, axis=0) + dice_smoothing)
    dice_loss = jnp.mean(1.0 - dice_coeff)

    logpt = jnp.sum(logp * onehot, axis=-1)
    pt = jnp.sum(p * onehot, axis=-1)
    focal_loss = jnp.mean(-((1.0 - pt) ** focal_gamma) * logpt)
    ce_loss = jnp.mean(-logpt)
    return dice_weight * dice_loss + focal_weight * focal_loss + ce_weight * ce_loss


if __name__ == "__main__":
    key = jax.random.PRNGKey(0)
    k1, k2 = jax.random.split(key)

    N, C, H, W = 2, 6, 16, 16  # dice_num_classes = 6
    prediction = jax.random.normal(k1, (N, C, H, W), dtype=jnp.float32)
    truth = jax.random.randint(k2, (N, H, W), 0, C, dtype=jnp.int32)

    out = composite_loss(prediction, truth)
    out = jax.block_until_ready(out)

    ref = composite_loss_ref(prediction, truth)
    assert jnp.allclose(out, ref, rtol=1e-5, atol=1e-5), (out, ref)

    print("KERNEL_OK")
</pallas_src>

<mosaic_0001>
module attributes {stable_mosaic.version = 11 : i64} {
  func.func @_composite_stats_kernel(%arg0: i32, %arg1: i32, %arg2: i32, %arg3: memref<1x6x256xf32, #tpu.memory_space<vmem>>, %arg4: memref<1x1x256xi8, #tpu.memory_space<vmem>>, %arg5: memref<1x6x3xf32, #tpu.memory_space<vmem>>, %arg6: memref<1x1x2xf32, #tpu.memory_space<vmem>>, %arg7: memref<6x1xf32, #tpu.memory_space<vmem>>, %arg8: memref<6x1xf32, #tpu.memory_space<vmem>>, %arg9: memref<6x1xf32, #tpu.memory_space<vmem>>, %arg10: memref<1x1xf32, #tpu.memory_space<vmem>>, %arg11: memref<1x1xf32, #tpu.memory_space<vmem>>) attributes {dimension_semantics = [#tpu.dimension_semantics<parallel>, #tpu.dimension_semantics<arbitrary>, #tpu.dimension_semantics<arbitrary>], iteration_bounds = array<i64: 1, 2, 1>, scalar_prefetch = 0 : i64, scratch_operands = 5 : i64, tpu.core_type = #tpu.core_type<tc>, window_params = [{transform_indices = @transform_0, window_bounds = array<i64: 1, 6, 256>}, {transform_indices = @transform_1, window_bounds = array<i64: 1, 1, 256>}, {transform_indices = @transform_2, window_bounds = array<i64: 1, 6, 3>}, {transform_indices = @transform_3, window_bounds = array<i64: 1, 1, 2>}]} {
    %c0_i32 = arith.constant 0 : i32
    %0 = arith.cmpi eq, %arg1, %c0_i32 : i32
    %c0_i32_0 = arith.constant 0 : i32
    %1 = arith.cmpi eq, %arg2, %c0_i32_0 : i32
    %2 = arith.andi %0, %1 : i1
    %3 = arith.extui %2 : i1 to i32
    %c0_i32_1 = arith.constant 0 : i32
    %4 = arith.cmpi ne, %3, %c0_i32_1 : i32
    scf.if %4 {
      %cst_43 = arith.constant 0.000000e+00 : f32
      %80 = vector.broadcast %cst_43 : f32 to vector<6x1xf32>
      %c0_44 = arith.constant 0 : index
      %c0_45 = arith.constant 0 : index
      %81 = vector.load %arg7[%c0_44, %c0_45] : memref<6x1xf32, #tpu.memory_space<vmem>>, vector<6x1xf32>
      tpu.vector_store %arg7[%c0_44, %c0_45], %80 {strides = array<i32>} : memref<6x1xf32, #tpu.memory_space<vmem>>, vector<6x1xf32>,
      %cst_46 = arith.constant 0.000000e+00 : f32
      %82 = vector.broadcast %cst_46 : f32 to vector<6x1xf32>
      %c0_47 = arith.constant 0 : index
      %c0_48 = arith.constant 0 : index
      %83 = vector.load %arg8[%c0_47, %c0_48] : memref<6x1xf32, #tpu.memory_space<vmem>>, vector<6x1xf32>
      tpu.vector_store %arg8[%c0_47, %c0_48], %82 {strides = array<i32>} : memref<6x1xf32, #tpu.memory_space<vmem>>, vector<6x1xf32>,
      %cst_49 = arith.constant 0.000000e+00 : f32
      %84 = vector.broadcast %cst_49 : f32 to vector<6x1xf32>
      %c0_50 = arith.constant 0 : index
      %c0_51 = arith.constant 0 : index
      %85 = vector.load %arg9[%c0_50, %c0_51] : memref<6x1xf32, #tpu.memory_space<vmem>>, vector<6x1xf32>
      tpu.vector_store %arg9[%c0_50, %c0_51], %84 {strides = array<i32>} : memref<6x1xf32, #tpu.memory_space<vmem>>, vector<6x1xf32>,
      %cst_52 = arith.constant 0.000000e+00 : f32
      %86 = vector.broadcast %cst_52 : f32 to vector<1x1xf32>
      %c0_53 = arith.constant 0 : index
      %c0_54 = arith.constant 0 : index
      %87 = vector.load %arg10[%c0_53, %c0_54] : memref<1x1xf32, #tpu.memory_space<vmem>>, vector<1x1xf32>
      tpu.vector_store %arg10[%c0_53, %c0_54], %86 {strides = array<i32>} : memref<1x1xf32, #tpu.memory_space<vmem>>, vector<1x1xf32>,
      %cst_55 = arith.constant 0.000000e+00 : f32
      %88 = vector.broadcast %cst_55 : f32 to vector<1x1xf32>
      %c0_56 = arith.constant 0 : index
      %c0_57 = arith.constant 0 : index
      %89 = vector.load %arg11[%c0_56, %c0_57] : memref<1x1xf32, #tpu.memory_space<vmem>>, vector<1x1xf32>
      tpu.vector_store %arg11[%c0_56, %c0_57], %88 {strides = array<i32>} : memref<1x1xf32, #tpu.memory_space<vmem>>, vector<1x1xf32>,
    } else {
    }
    %c0 = arith.constant 0 : index
    %c0_2 = arith.constant 0 : index
    %c0_3 = arith.constant 0 : index
    %5 = vector.load %arg3[%c0, %c0_2, %c0_3] : memref<1x6x256xf32, #tpu.memory_space<vmem>>, vector<1x6x256xf32>
    %6 = vector.shape_cast %5 : vector<1x6x256xf32> to vector<6x256xf32>
    %c0_4 = arith.constant 0 : index
    %c0_5 = arith.constant 0 : index
    %c0_6 = arith.constant 0 : index
    %7 = vector.load %arg4[%c0_4, %c0_5, %c0_6] : memref<1x1x256xi8, #tpu.memory_space<vmem>>, vector<1x1x256xi8>
    %8 = vector.shape_cast %7 : vector<1x1x256xi8> to vector<1x256xi8>
    %9 = arith.extsi %8 : vector<1x256xi8> to vector<1x256xi32>
    %cst = arith.constant dense<0xFF800000> : vector<256xf32>
    %10 = vector.multi_reduction <maximumf>, %6, %cst [0] : vector<6x256xf32> to vector<256xf32>
    %11 = vector.shape_cast %10 : vector<256xf32> to vector<1x256xf32>
    %12 = vector.broadcast %11 : vector<1x256xf32> to vector<6x256xf32>
    %13 = arith.subf %6, %12 : vector<6x256xf32>
    %14 = math.exp %13 : vector<6x256xf32>
    %cst_7 = arith.constant dense<0.000000e+00> : vector<256xf32>
    %15 = vector.multi_reduction <add>, %14, %cst_7 [0] : vector<6x256xf32> to vector<256xf32>
    %16 = vector.shape_cast %15 : vector<256xf32> to vector<1x256xf32>
    %17 = tpu.reciprocal %16 {approx = true} : vector<1x256xf32> -> vector<1x256xf32>
    %18 = arith.mulf %16, %17 : vector<1x256xf32>
    %cst_8 = arith.constant 2.000000e+00 : f32
    %19 = vector.broadcast %cst_8 : f32 to vector<1x256xf32>
    %20 = arith.subf %19, %18 : vector<1x256xf32>
    %21 = arith.mulf %17, %20 : vector<1x256xf32>
    %22 = vector.broadcast %21 : vector<1x256xf32> to vector<6x256xf32>
    %23 = arith.mulf %14, %22 : vector<6x256xf32>
    %24 = math.log %16 : vector<1x256xf32>
    %25 = tpu.iota {dimensions = array<i32: 0>} : vector<6x256xi32>
    %26 = vector.broadcast %9 : vector<1x256xi32> to vector<6x256xi32>
    %27 = arith.cmpi eq, %25, %26 : vector<6x256xi32>
    %28 = arith.extui %27 : vector<6x256xi1> to vector<6x256xi32>
    %29 = arith.sitofp %28 : vector<6x256xi32> to vector<6x256xf32>
    %30 = arith.mulf %23, %29 : vector<6x256xf32>
    %c0_9 = arith.constant 0 : index
    %c0_10 = arith.constant 0 : index
    %31 = vector.load %arg7[%c0_9, %c0_10] : memref<6x1xf32, #tpu.memory_space<vmem>>, vector<6x1xf32>
    %cst_11 = arith.constant dense<0.000000e+00> : vector<6xf32>
    %32 = vector.multi_reduction <add>, %30, %cst_11 [1] : vector<6x256xf32> to vector<6xf32>
    %33 = vector.shape_cast %32 : vector<6xf32> to vector<6x1xf32>
    %34 = arith.addf %31, %33 : vector<6x1xf32>
    %c0_12 = arith.constant 0 : index
    %c0_13 = arith.constant 0 : index
    %35 = vector.load %arg7[%c0_12, %c0_13] : memref<6x1xf32, #tpu.memory_space<vmem>>, vector<6x1xf32>
    tpu.vector_store %arg7[%c0_12, %c0_13], %34 {strides = array<i32>} : memref<6x1xf32, #tpu.memory_space<vmem>>, vector<6x1xf32>,
    %c0_14 = arith.constant 0 : index
    %c0_15 = arith.constant 0 : index
    %36 = vector.load %arg8[%c0_14, %c0_15] : memref<6x1xf32, #tpu.memory_space<vmem>>, vector<6x1xf32>
    %cst_16 = arith.constant dense<0.000000e+00> : vector<6xf32>
    %37 = vector.multi_reduction <add>, %23, %cst_16 [1] : vector<6x256xf32> to vector<6xf32>
    %38 = vector.shape_cast %37 : vector<6xf32> to vector<6x1xf32>
    %39 = arith.addf %36, %38 : vector<6x1xf32>
    %c0_17 = arith.constant 0 : index
    %c0_18 = arith.constant 0 : index
    %40 = vector.load %arg8[%c0_17, %c0_18] : memref<6x1xf32, #tpu.memory_space<vmem>>, vector<6x1xf32>
    tpu.vector_store %arg8[%c0_17, %c0_18], %39 {strides = array<i32>} : memref<6x1xf32, #tpu.memory_space<vmem>>, vector<6x1xf32>,
    %c0_19 = arith.constant 0 : index
    %c0_20 = arith.constant 0 : index
    %41 = vector.load %arg9[%c0_19, %c0_20] : memref<6x1xf32, #tpu.memory_space<vmem>>, vector<6x1xf32>
    %cst_21 = arith.constant dense<0.000000e+00> : vector<6xf32>
    %42 = vector.multi_reduction <add>, %29, %cst_21 [1] : vector<6x256xf32> to vector<6xf32>
    %43 = vector.shape_cast %42 : vector<6xf32> to vector<6x1xf32>
    %44 = arith.addf %41, %43 : vector<6x1xf32>
    %c0_22 = arith.constant 0 : index
    %c0_23 = arith.constant 0 : index
    %45 = vector.load %arg9[%c0_22, %c0_23] : memref<6x1xf32, #tpu.memory_space<vmem>>, vector<6x1xf32>
    tpu.vector_store %arg9[%c0_22, %c0_23], %44 {strides = array<i32>} : memref<6x1xf32, #tpu.memory_space<vmem>>, vector<6x1xf32>,
    %cst_24 = arith.constant dense<0.000000e+00> : vector<256xf32>
    %46 = vector.multi_reduction <add>, %29, %cst_24 [0] : vector<6x256xf32> to vector<256xf32>
    %47 = vector.shape_cast %46 : vector<256xf32> to vector<1x256xf32>
    %48 = arith.mulf %13, %29 : vector<6x256xf32>
    %cst_25 = arith.constant dense<0.000000e+00> : vector<256xf32>
    %49 = vector.multi_reduction <add>, %48, %cst_25 [0] : vector<6x256xf32> to vector<256xf32>
    %50 = vector.shape_cast %49 : vector<256xf32> to vector<1x256xf32>
    %51 = arith.mulf %47, %24 : vector<1x256xf32>
    %52 = arith.subf %50, %51 : vector<1x256xf32>
    %cst_26 = arith.constant dense<0.000000e+00> : vector<256xf32>
    %53 = vector.multi_reduction <add>, %30, %cst_26 [0] : vector<6x256xf32> to vector<256xf32>
    %54 = vector.shape_cast %53 : vector<256xf32> to vector<1x256xf32>
    %cst_27 = arith.constant 1.000000e+00 : f32
    %55 = vector.broadcast %cst_27 : f32 to vector<1x256xf32>
    %56 = arith.subf %55, %54 : vector<1x256xf32>
    %cst_28 = arith.constant 1.000000e+00 : f32
    %57 = vector.broadcast %cst_28 : f32 to vector<1x256xf32>
    %58 = arith.mulf %57, %56 : vector<1x256xf32>
    %59 = arith.mulf %58, %56 : vector<1x256xf32>
    %c0_29 = arith.constant 0 : index
    %c0_30 = arith.constant 0 : index
    %60 = vector.load %arg10[%c0_29, %c0_30] : memref<1x1xf32, #tpu.memory_space<vmem>>, vector<1x1xf32>
    %cst_31 = arith.constant 0.000000e+00 : f32
    %61 = vector.broadcast %cst_31 : f32 to vector<1x256xf32>
    %62 = arith.subf %61, %59 : vector<1x256xf32>
    %63 = arith.mulf %62, %52 : vector<1x256xf32>
    %cst_32 = arith.constant dense<0.000000e+00> : vector<1xf32>
    %64 = vector.multi_reduction <add>, %63, %cst_32 [1] : vector<1x256xf32> to vector<1xf32>
    %65 = vector.shape_cast %64 : vector<1xf32> to vector<1x1xf32>
    %66 = arith.addf %60, %65 : vector<1x1xf32>
    %c0_33 = arith.constant 0 : index
    %c0_34 = arith.constant 0 : index
    %67 = vector.load %arg10[%c0_33, %c0_34] : memref<1x1xf32, #tpu.memory_space<vmem>>, vector<1x1xf32>
    tpu.vector_store %arg10[%c0_33, %c0_34], %66 {strides = array<i32>} : memref<1x1xf32, #tpu.memory_space<vmem>>, vector<1x1xf32>,
    %c0_35 = arith.constant 0 : index
    %c0_36 = arith.constant 0 : index
    %68 = vector.load %arg11[%c0_35, %c0_36] : memref<1x1xf32, #tpu.memory_space<vmem>>, vector<1x1xf32>
    %cst_37 = arith.constant 0.000000e+00 : f32
    %69 = vector.broadcast %cst_37 : f32 to vector<1x256xf32>
    %70 = arith.subf %69, %52 : vector<1x256xf32>
    %cst_38 = arith.constant dense<0.000000e+00> : vector<1xf32>
    %71 = vector.multi_reduction <add>, %70, %cst_38 [1] : vector<1x256xf32> to vector<1xf32>
    %72 = vector.shape_cast %71 : vector<1xf32> to vector<1x1xf32>
    %73 = arith.addf %68, %72 : vector<1x1xf32>
    %c0_39 = arith.constant 0 : index
    %c0_40 = arith.constant 0 : index
    %74 = vector.load %arg11[%c0_39, %c0_40] : memref<1x1xf32, #tpu.memory_space<vmem>>, vector<1x1xf32>
    tpu.vector_store %arg11[%c0_39, %c0_40], %73 {strides = array<i32>} : memref<1x1xf32, #tpu.memory_space<vmem>>, vector<1x1xf32>,
    %c1_i32 = arith.constant 1 : i32
    %75 = arith.cmpi eq, %arg1, %c1_i32 : i32
    %c0_i32_41 = arith.constant 0 : i32
    %76 = arith.cmpi eq, %arg2, %c0_i32_41 : i32
    %77 = arith.andi %75, %76 : i1
    %78 = arith.extui %77 : i1 to i32
    %c0_i32_42 = arith.constant 0 : i32
    %79 = arith.cmpi ne, %78, %c0_i32_42 : i32
    scf.if %79 {
      %c0_43 = arith.constant 0 : index
      %c0_44 = arith.constant 0 : index
      %80 = vector.load %arg7[%c0_43, %c0_44] : memref<6x1xf32, #tpu.memory_space<vmem>>, vector<6x1xf32>
      %c0_45 = arith.constant 0 : index
      %c0_46 = arith.constant 0 : index
      %c0_47 = arith.constant 0 : index
      %81 = vector.load %arg5[%c0_45, %c0_46, %c0_47] : memref<1x6x3xf32, #tpu.memory_space<vmem>>, vector<1x6x1xf32>
      %82 = vector.shape_cast %81 : vector<1x6x1xf32> to vector<6x1xf32>
      %83 = vector.shape_cast %80 : vector<6x1xf32> to vector<1x6x1xf32>
      tpu.vector_store %arg5[%c0_45, %c0_46, %c0_47], %83 {strides = array<i32>} : memref<1x6x3xf32, #tpu.memory_space<vmem>>, vector<1x6x1xf32>,
      %c0_48 = arith.constant 0 : index
      %c0_49 = arith.constant 0 : index
      %84 = vector.load %arg8[%c0_48, %c0_49] : memref<6x1xf32, #tpu.memory_space<vmem>>, vector<6x1xf32>
      %c0_50 = arith.constant 0 : index
      %c0_51 = arith.constant 0 : index
      %c1 = arith.constant 1 : index
      %85 = vector.load %arg5[%c0_50, %c0_51, %c1] : memref<1x6x3xf32, #tpu.memory_space<vmem>>, vector<1x6x1xf32>
      %86 = vector.shape_cast %85 : vector<1x6x1xf32> to vector<6x1xf32>
      %87 = vector.shape_cast %84 : vector<6x1xf32> to vector<1x6x1xf32>
      tpu.vector_store %arg5[%c0_50, %c0_51, %c1], %87 {strides = array<i32>} : memref<1x6x3xf32, #tpu.memory_space<vmem>>, vector<1x6x1xf32>,
      %c0_52 = arith.constant 0 : index
      %c0_53 = arith.constant 0 : index
      %88 = vector.load %arg9[%c0_52, %c0_53] : memref<6x1xf32, #tpu.memory_space<vmem>>, vector<6x1xf32>
      %c0_54 = arith.constant 0 : index
      %c0_55 = arith.constant 0 : index
      %c2 = arith.constant 2 : index
      %89 = vector.load %arg5[%c0_54, %c0_55, %c2] : memref<1x6x3xf32, #tpu.memory_space<vmem>>, vector<1x6x1xf32>
      %90 = vector.shape_cast %89 : vector<1x6x1xf32> to vector<6x1xf32>
      %91 = vector.shape_cast %88 : vector<6x1xf32> to vector<1x6x1xf32>
      tpu.vector_store %arg5[%c0_54, %c0_55, %c2], %91 {strides = array<i32>} : memref<1x6x3xf32, #tpu.memory_space<vmem>>, vector<1x6x1xf32>,
      %c0_56 = arith.constant 0 : index
      %c0_57 = arith.constant 0 : index
      %92 = vector.load %arg10[%c0_56, %c0_57] : memref<1x1xf32, #tpu.memory_space<vmem>>, vector<1x1xf32>
      %c0_58 = arith.constant 0 : index
      %c0_59 = arith.constant 0 : index
      %c0_60 = arith.constant 0 : index
      %93 = vector.load %arg6[%c0_58, %c0_59, %c0_60] : memref<1x1x2xf32, #tpu.memory_space<vmem>>, vector<1x1x1xf32>
      %94 = vector.shape_cast %93 : vector<1x1x1xf32> to vector<1x1xf32>
      %95 = vector.shape_cast %92 : vector<1x1xf32> to vector<1x1x1xf32>
      tpu.vector_store %arg6[%c0_58, %c0_59, %c0_60], %95 {strides = array<i32>} : memref<1x1x2xf32, #tpu.memory_space<vmem>>, vector<1x1x1xf32>,
      %c0_61 = arith.constant 0 : index
      %c0_62 = arith.constant 0 : index
      %96 = vector.load %arg11[%c0_61, %c0_62] : memref<1x1xf32, #tpu.memory_space<vmem>>, vector<1x1xf32>
      %c0_63 = arith.constant 0 : index
      %c0_64 = arith.constant 0 : index
      %c1_65 = arith.constant 1 : index
      %97 = vector.load %arg6[%c0_63, %c0_64, %c1_65] : memref<1x1x2xf32, #tpu.memory_space<vmem>>, vector<1x1x1xf32>
      %98 = vector.shape_cast %97 : vector<1x1x1xf32> to vector<1x1xf32>
      %99 = vector.shape_cast %96 : vector<1x1xf32> to vector<1x1x1xf32>
      tpu.vector_store %arg6[%c0_63, %c0_64, %c1_65], %99 {strides = array<i32>} : memref<1x1x2xf32, #tpu.memory_space<vmem>>, vector<1x1x1xf32>,
    } else {
    }
    return
  }
  func.func @transform_0(%arg0: i32, %arg1: i32, %arg2: i32) -> (i32, i32, i32) {
    %c1_i32 = arith.constant 1 : i32
    %0 = arith.muli %arg0, %c1_i32 : i32
    %1 = arith.addi %0, %arg2 : i32
    %c0_i32 = arith.constant 0 : i32
    %2 = arith.minsi %1, %c0_i32 : i32
    %c0_i32_0 = arith.constant 0 : i32
    %c0_i32_1 = arith.constant 0 : i32
    return %arg1, %c0_i32_0, %2 : i32, i32, i32
  }
  func.func @transform_1(%arg0: i32, %arg1: i32, %arg2: i32) -> (i32, i32, i32) {
    %c1_i32 = arith.constant 1 : i32
    %0 = arith.muli %arg0, %c1_i32 : i32
    %1 = arith.addi %0, %arg2 : i32
    %c0_i32 = arith.constant 0 : i32
    %2 = arith.minsi %1, %c0_i32 : i32
    %c0_i32_0 = arith.constant 0 : i32
    %c0_i32_1 = arith.constant 0 : i32
    return %arg1, %c0_i32_0, %2 : i32, i32, i32
  }
  func.func @transform_2(%arg0: i32, %arg1: i32, %arg2: i32) -> (i32, i32, i32) {
    %c0_i32 = arith.constant 0 : i32
    %c0_i32_0 = arith.constant 0 : i32
    %c0_i32_1 = arith.constant 0 : i32
    return %arg0, %c0_i32, %c0_i32_0 : i32, i32, i32
  }
  func.func @transform_3(%arg0: i32, %arg1: i32, %arg2: i32) -> (i32, i32, i32) {
    %c0_i32 = arith.constant 0 : i32
    %c0_i32_0 = arith.constant 0 : i32
    %c0_i32_1 = arith.constant 0 : i32
    return %arg0, %c0_i32, %c0_i32_0 : i32, i32, i32
  }
}

</mosaic_0001>

<bundles_post_ra>
// kernel: tpu_custom_call.1
= control target key start
LH: loop header
LB: loop body
LE: loop exit
PB: predicated region body
PF: predicated region fallthrough
CT: control target
= control target key end

     0   :  { %9 = vsyncpa [#allocation8], 0  ;;  %s756_s12 = smov 0   ;;  %s758_s13 = smov 0   ;;  %s853_s0 = inlined_call_operand.vmem [shape: f32[2,6,256], index: 0, kind: input, shape index: {}]   ;;  %s854_s1 = inlined_call_operand.vmem [shape: s8[2,1,256], index: 1, kind: input, shape index: {}]   ;;  %s855_s2 = inlined_call_operand.vmem [shape: f32[1,6,3], index: 2, kind: output, shape index: {0}]   ;;  %s856_s3 = inlined_call_operand.hbm [shape: f32[1,1,2], index: 3, kind: output, shape index: {1}]  }
   0x1   :  { %s760_s14 = smov 0  }
   0x2 LB: > { %s612_s15 = sadd.s32 4294967295, %s729_s14   ;;  %s30_s16 = sadd.s32 1, %s725_s13  ;;  %s729_s14 = sphi %s760_s14, %s15_s14   ;;  %s725_s13 = sphi %s758_s13, %s859_s13   ;;  %s721_s12 = sphi %s756_s12, %s858_s12  }
   0x3   : > { %p32_p0 = scmp.ge.s32.totalorder %s30_s16, 2  ;;  %p615_p1 = scmp.ge.s32.totalorder %s729_s14, 1 }
   0x4   : > { %p207_p2 = scmp.lt.s32.totalorder %s729_s14, 3 }
   0x5   : > { %s861_s16 = smov (%p32_p0, %s30_s16), 0 }
   0x6   : > { %p208_p3 = pnand %p615_p1, %p207_p2 }
   0x7   : > { %p252_p4 = scmp.lt.s32.totalorder (!%p208_p3), %s721_s12, 1  ;;  %p283_p5 = scmp.eq.s32.totalorder (!%p208_p3), %s721_s12, 0 }
   0x8   : > { %211 = sbr.rel (%p208_p3) target bundleno = 377 (0x179), region = 28 }
   0xd   : > { %s253_s17 = scalar_select %p252_p4, %s721_s12, 1  ;;  %vm289_vm0 = vcmask (%p283_p5), 5120   ;;  %vm293_vm1 = vcmask (%p283_p5), 0   ;;  %v731_v0 = vmov (%p283_p5), 0.0  }
   0xe   : > { %288 = sbr.rel (!%p283_p5) target bundleno = 19 (0x13), region = 32  ;;  %290 = vst.msk [vmem:[#allocation2] sm:$0x3f] (%p283_p5), %vm289_vm0, %v731_v0  ;;  %291 = vst.msk [vmem:[#allocation3] sm:$0x3f] (%p283_p5), %vm289_vm0, %v731_v0 }
   0xf   : > { %s629_s18 = sshll.u32 %s253_s17, 4  ;;  %s618_s19 = sshll.u32 %s253_s17, 1  ;;  %292 = vst.msk [vmem:[#allocation4] sm:$0x3f] (%p283_p5), %vm289_vm0, %v731_v0 }
  0x10   : > { %s259_s22 = scalar_lea.vmem %s853_s0, %s629_s18  ;;  %s274_s25 = scalar_lea.vmem %s854_s1, %s618_s19  ;;  %294 = vst.msk [vmem:[#allocation5] sm:$0x1] (%p283_p5), %vm293_vm1, %v731_v0  ;;  %295 = vst.msk [vmem:[#allocation6] sm:$0x1] (%p283_p5), %vm293_vm1, %v731_v0 }
  0x13 PF: > { %v296_v1 = vld [vmem:[%s259_s22] sm:$0x3f]  ;;  %v297_v2 = vld [vmem:[%s259_s22 + $0x8] sm:$0x3f]  ;;  %vm300_vm2 = vcmask 1045504   ;;  %v349_v3 = vlaneseq  ;;  %v732_v25 = vmov 0.0  }
  0x14   : > { %v301_v4 = vsel %vm300_vm2, %v296_v1, -inf  ;;  %v308_v5 = vsel %vm300_vm2, %v297_v2, -inf  ;;  %v298_v6 = vld [vmem:[%s274_s25] sm:$0x3]  ;;  %p467_p6 = scmp.eq.s32.totalorder %s721_s12, 1  ;;  %vm382_vm5 = vcmask 5120  }
  0x15   : > { %v302_v7 = vrot.slane %v301_v4, 4  ;;  %v309_v8 = vrot.slane %v308_v5, 4  ;;  %v299_v9 = vunpack.c.0.s8 %v298_v6  ;;  %v350_v10 = vshrl.u32 %v349_v3, 7  ;;  %s733_s26 = smov (%p467_p6), 1   ;;  %s734_s29 = smov (%p467_p6), 2  }
  0x16   : > { %vm457_vm6 = vcmask 0   ;;  %vm479_vm7 = vcmask (%p467_p6), 13320   ;;  %vm499_vm8 = vcmask (%p467_p6), 8200   ;;  %vm486_vm9 = vcmask (%p467_p6), 21520  }
  0x17   : > { %v303_v11 = vmax.f32 %v301_v4, %v302_v7  ;;  %v310_v12 = vmax.f32 %v308_v5, %v309_v8  ;;  %v353_v13 = vsub.s32 0, %v350_v10  ;;  %v357_v14 = vsub.s32 4, %v350_v10 }
  0x19   : > { %v304_v15 = vrot.slane %v303_v11, 2  ;;  %v311_v16 = vrot.slane %v310_v12, 2  ;;  %v354_v17 = vrot.slane %v299_v9, %v353_v13  ;;  %v358_v18 = vrot.slane %v299_v9, %v357_v14 }
  0x1b   : > { %v305_v19 = vmax.f32 %v303_v11, %v304_v15  ;;  %v312_v20 = vmax.f32 %v310_v12, %v311_v16  ;;  %v362_v21 = vrot.slane %v354_v17, %v353_v13  ;;  %v366_v22 = vrot.slane %v358_v18, %v353_v13 }
  0x1d   : > { %v306_v23 = vrot.slane %v305_v19, 1  ;;  %v313_v24 = vrot.slane %v312_v20, 1  ;;  %vm367_vm3 = vcmp.eq.s32.totalorder %v350_v10, %v362_v21  ;;  %vm368_vm4 = vcmp.eq.s32.totalorder %v350_v10, %v366_v22 }
  0x1e   : > { %v788_v26 = vsel %vm367_vm3, 1.0, %v732_v25  ;;  %v790_v27 = vsel %vm368_vm4, 1.0, %v732_v25 }
  0x1f   : > { %v307_v28 = vmax.f32 %v305_v19, %v306_v23  ;;  %v314_v29 = vmax.f32 %v312_v20, %v313_v24  ;;  %v393_v30 = vsel %vm300_vm2, %v788_v26, 0.0  ;;  %v394_v31 = vsel %vm300_vm2, %v790_v27, 0.0 }
  0x20   : > { %v395_v32 = vadd.f32 %v394_v31, %v393_v30  ;;  %v400_v50 = vrot.slane %v393_v30, 4  ;;  %v406_v52 = vrot.slane %v394_v31, 4 }
  0x21   : > { %v315_v33 = vsub.f32 %v296_v1, %v307_v28  ;;  %v316_v34 = vsub.f32 %v297_v2, %v314_v29 }
  0x22   : > { %396 = vadd.xlane.f32.xlu1 %v395_v32  ;;  %v401_v58 = vadd.f32 %v400_v50, %v393_v30  ;;  %v407_v62 = vadd.f32 %v406_v52, %v394_v31 }
  0x23   : > { %v317_v35 = vmul.f32 1.442695, %v315_v33  ;;  %v319_v36 = vmul.f32 1.442695, %v316_v34  ;;  %v412_v45 = vmul.f32 %v788_v26, %v315_v33  ;;  %v413_v46 = vmul.f32 %v790_v27, %v316_v34 }
  0x24   : > { %v402_v63 = vrot.slane %v401_v58, 2  ;;  %v408_v2 = vrot.slane %v407_v62, 2 }
  0x25   : > { %667 = vpow2.f32 %v317_v35  ;;  %v414_v53 = vsel %vm300_vm2, %v412_v45, 0.0  ;;  %v421_v54 = vsel %vm300_vm2, %v413_v46, 0.0 }
  0x26   : > { %669 = vpow2.f32 %v319_v36  ;;  %v415_v59 = vrot.slane %v414_v53, 4  ;;  %v422_v60 = vrot.slane %v421_v54, 4  ;;  %v403_v3 = vadd.f32 %v402_v63, %v401_v58 }
  0x27   : > { %v409_v6 = vadd.f32 %v408_v2, %v407_v62 }
  0x28   : > { %v416_v0 = vadd.f32 %v415_v59, %v414_v53  ;;  %v423_v1 = vadd.f32 %v422_v60, %v421_v54  ;;  %v404_v7 = vrot.slane %v403_v3, 1 }
  0x29   : > { %v410_v10 = vrot.slane %v409_v6, 1 }
  0x2a   : > { %v417_v4 = vrot.slane %v416_v0, 2  ;;  %v424_v5 = vrot.slane %v423_v1, 2  ;;  %v405_v14 = vadd.f32 %v404_v7, %v403_v3  ;;  %v392_v3 = vld [vmem:[#allocation4] sm:$0x3f] }
  0x2b   : > { %v411_v19 = vadd.f32 %v410_v10, %v409_v6  ;;  %v384_v6 = vld [vmem:[#allocation3] sm:$0x3f] }
  0x2c   : > { %v418_v8 = vadd.f32 %v417_v4, %v416_v0  ;;  %v425_v9 = vadd.f32 %v424_v5, %v423_v1 }
  0x2e   : > { %v419_v15 = vrot.slane %v418_v8, 1  ;;  %v426_v16 = vrot.slane %v425_v9, 1 }
  0x30   : > { %v420_v28 = vadd.f32 %v419_v15, %v418_v8  ;;  %v427_v29 = vadd.f32 %v426_v16, %v425_v9  ;;  %v375_v9 = vld [vmem:[#allocation2] sm:$0x3f]  ;;  %v448_v15 = vld [vmem:[#allocation5] sm:$0x1] }
  0x32   : > { %v668_v37 = vpop.eup %667 }
  0x33   : > { %v670_v38 = vpop.eup %669  ;;  %v321_v39 = vsel %vm300_vm2, %v668_v37, 0.0 }
  0x34   : > { %v322_v40 = vrot.slane %v321_v39, 4  ;;  %v328_v41 = vsel %vm300_vm2, %v670_v38, 0.0 }
  0x35   : > { %v329_v42 = vrot.slane %v328_v41, 4 }
  0x36   : > { %v323_v43 = vadd.f32 %v322_v40, %v321_v39 }
  0x37   : > { %v330_v44 = vadd.f32 %v329_v42, %v328_v41 }
  0x38   : > { %v324_v47 = vrot.slane %v323_v43, 2 }
  0x39   : > { %v331_v48 = vrot.slane %v330_v44, 2 }
  0x3a   : > { %v325_v49 = vadd.f32 %v324_v47, %v323_v43 }
  0x3b   : > { %v332_v51 = vadd.f32 %v331_v48, %v330_v44 }
  0x3c   : > { %v326_v55 = vrot.slane %v325_v49, 1 }
  0x3d   : > { %v333_v56 = vrot.slane %v332_v51, 1 }
  0x3e   : > { %v327_v57 = vadd.f32 %v326_v55, %v325_v49 }
  0x3f   : > { %v334_v61 = vadd.f32 %v333_v56, %v332_v51 }
  0x40   : > { %671 = vrcp.f32 %v327_v57 }
  0x41   : > { %673 = vrcp.f32 %v334_v61 }
  0x42   : > { %675 = vlog2.f32 %v327_v57 }
  0x43   : > { %677 = vlog2.f32 %v334_v61 }
  0x4d   : > { %v672_v11 = vpop.eup %671 }
  0x4e   : > { %v674_v12 = vpop.eup %673  ;;  %v337_v13 = vmul.f32 %v672_v11, %v327_v57 }
  0x4f   : > { %v676_v17 = vpop.eup %675  ;;  %v338_v18 = vmul.f32 %v674_v12, %v334_v61 }
  0x50   : > { %v678_v20 = vpop.eup %677  ;;  %v339_v21 = vsub.f32 2.0, %v337_v13  ;;  %v346_v22 = vmul.f32 0.6931472, %v676_v17 }
  0x51   : > { %v340_v23 = vsub.f32 2.0, %v338_v18  ;;  %v348_v24 = vmul.f32 0.6931472, %v678_v20 }
  0x52   : > { %v341_v25 = vmul.f32 %v672_v11, %v339_v21  ;;  %v428_v30 = vmul.f32 %v405_v14, %v346_v22 }
  0x53   : > { %v342_v31 = vmul.f32 %v674_v12, %v340_v23  ;;  %v429_v32 = vmul.f32 %v411_v19, %v348_v24  ;;  %v459_v12 = vld [vmem:[#allocation6] sm:$0x1] }
  0x54   : > { %v343_v33 = vmul.f32 %v668_v37, %v341_v25  ;;  %v430_v39 = vsub.f32 %v420_v28, %v428_v30 }
  0x55   : > { %v344_v34 = vmul.f32 %v670_v38, %v342_v31  ;;  %v431_v40 = vsub.f32 %v427_v29, %v429_v32 }
  0x56   : > { %v385_v35 = vsel %vm300_vm2, %v343_v33, 0.0  ;;  %v373_v36 = vmul.f32 %v788_v26, %v343_v33  ;;  %v460_v38 = vsub.f32 0.0, %v430_v39 }
  0x57   : > { %v386_v41 = vsel %vm300_vm2, %v344_v34, 0.0  ;;  %v374_v42 = vmul.f32 %v790_v27, %v344_v34  ;;  %v461_v48 = vsub.f32 0.0, %v431_v40 }
  0x58   : > { %v387_v43 = vadd.f32 %v386_v41, %v385_v35  ;;  %v376_v44 = vsel %vm300_vm2, %v373_v36, 0.0 }
  0x59   : > { %v377_v45 = vsel %vm300_vm2, %v374_v42, 0.0  ;;  %v432_v46 = vrot.slane %v376_v44, 4  ;;  %v462_v52 = vadd.f32 %v461_v48, %v460_v38 }
  0x5a   : > { %388 = vadd.xlane.f32.xlu0 %v387_v43  ;;  %v378_v47 = vadd.f32 %v377_v45, %v376_v44  ;;  %v438_v37 = vrot.slane %v377_v45, 4 }
  0x5b   : > { %v433_v49 = vadd.f32 %v432_v46, %v376_v44 }
  0x5c   : > { %v439_v50 = vadd.f32 %v438_v37, %v377_v45 }
  0x5d   : > { %v434_v26 = vrot.slane %v433_v49, 2 }
  0x5e   : > { %v440_v51 = vrot.slane %v439_v50, 2  ;;  %379 = vadd.xlane.f32.xlu0 %v378_v47 }
  0x5f   : > { %v435_v53 = vadd.f32 %v434_v26, %v433_v49 }
  0x60   : > { %v441_v54 = vadd.f32 %v440_v51, %v439_v50 }
  0x61   : > { %v436_v27 = vrot.slane %v435_v53, 1 }
  0x62   : > { %v442_v55 = vrot.slane %v441_v54, 1  ;;  %463 = vadd.xlane.f32.xlu0 %v462_v52 }
  0x63   : > { %v437_v56 = vadd.f32 %v436_v27, %v435_v53 }
  0x64   : > { %v443_v57 = vadd.f32 %v442_v55, %v441_v54 }
  0x65   : > { %v444_v58 = vsub.f32 1.0, %v437_v56 }
  0x66   : > { %v445_v59 = vsub.f32 1.0, %v443_v57 }
  0x67   : > { %v446_v60 = vmul.f32 %v444_v58, %v444_v58 }
  0x68   : > { %v447_v61 = vmul.f32 %v445_v59, %v445_v59 }
  0x69   : > { %v449_v62 = vsub.f32 0.0, %v446_v60 }
  0x6a   : > { %v450_v63 = vsub.f32 0.0, %v447_v61 }
  0x6b   : > { %v451_v0 = vmul.f32 %v449_v62, %v430_v39 }
  0x6c   : > { %v452_v1 = vmul.f32 %v450_v63, %v431_v40 }
  0x6e   : > { %v453_v2 = vadd.f32 %v452_v1, %v451_v0 }
  0x70   : > { %454 = vadd.xlane.f32.xlu1 %v453_v2 }
  0xab   : > { %v397_v4 = vpop.xlane.xlu1 %396 }
  0xac   : > { %v398_v5 = vadd.f32 %v397_v4, %v392_v3 }
  0xae   : > { %399 = vst.msk [vmem:[#allocation4] sm:$0x3f] %vm382_vm5, %v398_v5 }
  0xb5   : > { %v481_v21 = vld [vmem:[#allocation4] sm:$0x3f] (%p467_p6) }
  0xe3   : > { %v389_v7 = vpop.xlane.xlu0 %388 }
  0xe4   : > { %v390_v8 = vadd.f32 %v389_v7, %v384_v6 }
  0xe6   : > { %391 = vst.msk [vmem:[#allocation3] sm:$0x3f] %vm382_vm5, %v390_v8 }
  0xe7   : > { %v380_v10 = vpop.xlane.xlu0 %379 }
  0xe8   : > { %v381_v11 = vadd.f32 %v380_v10, %v375_v9 }
  0xea   : > { %383 = vst.msk [vmem:[#allocation2] sm:$0x3f] %vm382_vm5, %v381_v11 }
  0xeb   : > { %v464_v13 = vpop.xlane.xlu0 %463 }
  0xec   : > { %v465_v14 = vadd.f32 %v464_v13, %v459_v12 }
  0xed   : > { %v474_v18 = vld [vmem:[#allocation3] sm:$0x3f] (%p467_p6) }
  0xee   : > { %466 = vst.msk [vmem:[#allocation6] sm:$0x1] %vm457_vm6, %v465_v14  ;;  %476 = vrot.lane.b32.xlu0 (%p467_p6), %v474_v18, %s733_s26 }
  0xf1   : > { %v472_v20 = vld [vmem:[#allocation2] sm:$0x3f] (%p467_p6) }
  0xf2   : > { %473 = vst.msk [vmem:[%s855_s2] sm:$0x3f] (%p467_p6), %vm382_vm5, %v472_v20  ;;  %483 = vrot.lane.b32.xlu0 (%p467_p6), %v481_v21, %s734_s29 }
  0xf5   : > { %v623_v19 = vld [vmem:[#allocation6] ss:$0 sm:$0xff] (%p467_p6) }
  0xf6   : > { %496 = vrot.lane.b32.xlu1 (%p467_p6), %v623_v19, %s733_s26 }
  0xf8   : > { %471 = sbr.rel (!%p467_p6) target bundleno = 362 (0x16a), region = 36 }
  0xf9   : > { %v455_v16 = vpop.xlane.xlu1 %454 }
  0xfa   : > { %v456_v17 = vadd.f32 %v455_v16, %v448_v15 }
  0xfc   : > { %458 = vst.msk [vmem:[#allocation5] sm:$0x1] %vm457_vm6, %v456_v17 }
 0x103   : > { %v488_v22 = vld [vmem:[#allocation5] sm:$0x1] }
 0x104   : > { %489 = vst.msk [vmem:[#allocation7] sm:$0x1] %vm457_vm6, %v488_v22 }
 0x160   : > { %v477_v23 = vpop.permute.xlu0 %476 }
 0x161   : > { %480 = vst.msk [vmem:[%s855_s2] sm:$0x3f] %vm479_vm7, %v477_v23 }
 0x164   : > { %v484_v25 = vpop.permute.xlu0 %483 }
 0x165   : > { %487 = vst.msk [vmem:[%s855_s2] sm:$0x3f] %vm486_vm9, %v484_v25 }
 0x168   : > { %v497_v24 = vpop.permute.xlu1 %496 }
 0x169   : > { %500 = vst.msk [vmem:[#allocation7] sm:$0x1] %vm499_vm8, %v497_v24 }
 0x16a PF: > { %p829_p7 = scmp.eq.s32.totalorder %s612_s15, 1  ;;  %s735_s8 = smov [#allocation7]  }
 0x16b   : > { %s517_s9 = sshll.u32 %s735_s8, 4  ;;  %s518_s9 = int_to_ptr.vmem [resolvable:$true] %s517_s9 }
 0x16c   : > { %s679_s10 = scalar_lea.vmem %s518_s9, 16  ;;  %s685_s11 = scalar_lea.vmem %s518_s9, 32 }
 0x16d   : > { %p680_p8 = scmp.ne.s32.totalorder %s518_s9, %s679_s10  ;;  %p686_p11 = scmp.lt.s32.totalorder %s518_s9, %s518_s9 }
 0x16e   : > { %p687_p12 = scmp.lt.s32.totalorder %s685_s11, %s679_s10 }
 0x16f   : > { %p681_p9 = pnand %p680_p8, %p829_p7 }
 0x170   : > { %p688_p13 = por %p687_p12, %p686_p11 }
 0x171   : > { %p682_p10 = pneg %p681_p9 }
 0x173   : > { %p689_p0 = pnand %p688_p13, %p682_p10 }
 0x175   : > { %692 = shalt.err (!%p689_p0)
}
 0x176   : > { %633 = dma.vmem_to_hbm [thread:$0]  (%p829_p7), %s518_s9, 16, %s856_s3, [#allocation8]  }
 0x177   : > { %716 = dma.done.wait (%p829_p7), [#allocation8], 16  }
 0x178   : > { %718 = vsyncadd (%p829_p7), [#allocation8], 4294967280 }
 0x179 PF: > { %s15_s14 = sadd.s32 1, %s729_s14   ;;  %s858_s12 = smov %s725_s13 }
 0x17a   : > { %p12_p1 = scmp.ge.s32.totalorder %s15_s14, 4   ;;  %s859_s13 = smov %s861_s16 }
 0x17c   :  { %14 = sbr.rel (!%p12_p1) target bundleno = 2 (0x2), region = 79 }
 0x181   :  { %537 = vsyncpa [#allocation8], 1 }
 0x182   :  { %539 = vsyncpa [#allocation8 + $0x1], 1 }

</bundles_post_ra>
